<compile_context>
chip_gen: v5e
topology: v5e:2x2
jax: 0.10.0
libtpu: 0.0.40
codegen_flags: <defaults>
</compile_context>

<pallas_src>
import functools

import jax
import jax.numpy as jnp
from jax.experimental import pallas as pl
from jax.experimental.pallas import tpu as pltpu

LANES = 128
CHUNK_ROWS = 64   # 8 f32 vregs per accumulation chunk -> 8 independent VALU
                  # chains; also a multiple of every dtype's sublane packing.


def _round_up(a, b):
    return ((a + b - 1) // b) * b


@functools.lru_cache(maxsize=None)
def _device_constants():
    """(num_row_splits, max_tile_rows) chosen per TPU generation.

    Dual-TensorCore chips (v4 / v5p / v7x) get a size-2 leading "parallel"
    grid axis (each core streams half the rows -> 2x HBM paths) and bigger
    tiles (8192x128 f32 = 4 MiB each; 16 MiB double-buffered).  Single-TC
    chips (v5e / v6e) use one split: the split there is pure overhead
    (smaller tiles, extra steps, extra padding), and 4096-row tiles already
    push per-step overhead under ~10%.
    """
    try:
        kind = jax.devices()[0].device_kind.lower()
    except Exception:
        kind = ""
    dual_tc = any(tag in kind for tag in ("v4", "v5p", "v7"))
    if dual_tc:
        return 2, 8192
    return 1, 4096


def _plan(n_elements):
    """Row-tiling plan for the lane-dense (rows, 128) slab.

    tile_rows is always a multiple of CHUNK_ROWS, so the plan is dtype
    independent and the kernel's chunked accumulation divides evenly.
    Returns (splits, tile_rows, steps, padded_rows).
    """
    splits, max_tile_rows = _device_constants()
    total_rows = pl.cdiv(n_elements, LANES)
    rows_per_split = pl.cdiv(total_rows, splits)
    tile_rows = min(max_tile_rows, _round_up(rows_per_split, CHUNK_ROWS))
    steps = pl.cdiv(rows_per_split, tile_rows)
    padded_rows = splits * steps * tile_rows
    return splits, tile_rows, steps, padded_rows


def _to_padded_2d(a, padded_rows):
    """Flatten to (padded_rows, 128) in native dtype; pad only if ragged.

    Zero padding is correct because BOTH operands are padded with the same
    plan (0 - 0 contributes nothing to the squared-difference sum).
    """
    # TODO(synk): for ragged shapes, replace the jnp.pad copy of the *input*
    # with an in-kernel tail mask (iota element-id vs valid count) to save a
    # full HBM read+write pass.
    flat = a.reshape(-1)
    pad = padded_rows * LANES - flat.shape[0]
    if pad:
        flat = jnp.pad(flat, (0, pad))
    return flat.reshape(padded_rows, LANES)


def _mse_partial_kernel(x_ref, y_ref, out_ref):
    """Accumulate sum((x - y)^2) of one (tile_rows, 128) tile into a
    per-split (CHUNK_ROWS, 128) f32 slab."""
    j = pl.program_id(1)  # reduction axis (last, "arbitrary")

    @pl.when(j == 0)
    def _():
        out_ref[...] = jnp.zeros_like(out_ref)

    tile_rows = x_ref.shape[0]
    n_chunks = tile_rows // CHUNK_ROWS  # exact: tile_rows % CHUNK_ROWS == 0

    def body(i, acc):
        r0 = pl.multiple_of(i * CHUNK_ROWS, CHUNK_ROWS)
        d = (x_ref[pl.ds(r0, CHUNK_ROWS), :].astype(jnp.float32)
             - y_ref[pl.ds(r0, CHUNK_ROWS), :].astype(jnp.float32))
        return acc + d * d  # 8 independent per-vreg accumulation chains

    acc = jax.lax.fori_loop(
        0, n_chunks, body,
        jnp.zeros((CHUNK_ROWS, LANES), jnp.float32),
        unroll=min(n_chunks, 8),
    )
    out_ref[...] += acc


def _mse_partial_sums(x2d, t2d, splits, tile_rows, steps, n_valid):
    """Returns (splits*CHUNK_ROWS, 128) f32 partial sums of squared diffs."""

    def row_block(c, j):
        return (c * steps + j, 0)

    x_item = jnp.dtype(x2d.dtype).itemsize
    t_item = jnp.dtype(t2d.dtype).itemsize
    out_rows = splits * CHUNK_ROWS

    cost = pl.CostEstimate(
        flops=3 * n_valid,
        transcendentals=0,
        bytes_accessed=x2d.size * x_item + t2d.size * t_item
        + out_rows * LANES * 4,
    )

    # 2 inputs x 2 pipeline buffers per tile; only raise the scoped-VMEM
    # limit when the big-tile (dual-TC) plan would not fit a 16 MiB default.
    buf_bytes = 2 * tile_rows * LANES * (x_item + t_item)
    vmem_limit = None
    if buf_bytes > 12 * 1024 * 1024:
        vmem_limit = min(buf_bytes + (8 << 20), 48 << 20)

    return pl.pallas_call(
        _mse_partial_kernel,
        out_shape=jax.ShapeDtypeStruct((out_rows, LANES), jnp.float32),
        grid_spec=pltpu.PrefetchScalarGridSpec(
            num_scalar_prefetch=0,
            grid=(splits, steps),
            in_specs=[
                pl.BlockSpec((tile_rows, LANES), row_block),
                pl.BlockSpec((tile_rows, LANES), row_block),
            ],
            out_specs=pl.BlockSpec((CHUNK_ROWS, LANES), lambda c, j: (c, 0)),
        ),
        compiler_params=pltpu.CompilerParams(
            # "parallel" is the documented megacore-sharding semantic; on
            # single-TC chips splits == 1 so this axis costs nothing.
            # TODO(synk): on v7x, verify in a profile that the size-2 axis is
            # sharded across both TensorCores; if not, switch it to
            # pltpu.CORE_PARALLEL (or a pl.core_map over a 2-core mesh).
            dimension_semantics=("parallel", "arbitrary"),
            vmem_limit_bytes=vmem_limit,
        ),
        cost_estimate=cost,
    )(x2d, t2d)


def _forward_impl(x, target2d):
    n = x.size
    splits, tile_rows, steps, padded_rows = _plan(n)
    assert target2d.shape == (padded_rows, LANES), (
        "target slab was built with a different tiling plan")
    x2d = _to_padded_2d(x, padded_rows)
    partials = _mse_partial_sums(x2d, target2d, splits, tile_rows, steps, n)
    return jnp.sum(partials) / jnp.float32(n)


# pallas_call has no autodiff rule; ContentLoss backprops to the input image
# in style transfer -> analytic VJP: d/dx mean((x - t)^2) = 2*(x - t)/n.
@jax.custom_vjp
def _content_mse_vs_slab(x, target2d):
    return _forward_impl(x, target2d)


def _content_mse_fwd(x, target2d):
    return _forward_impl(x, target2d), (x, target2d)


def _content_mse_bwd(res, g):
    x, target2d = res
    n = x.size
    target = target2d.reshape(-1)[:n].reshape(x.shape)
    diff = x.astype(jnp.float32) - target.astype(jnp.float32)
    gx = (2.0 / n) * g * diff
    # Cotangent for the (detached) target slab: mathematically correct; DCE'd
    # whenever only the input-image gradient is requested.
    gt = (-gx).reshape(-1)
    pad = target2d.size - n
    if pad:
        gt = jnp.pad(gt, (0, pad))
    return gx.astype(x.dtype), gt.reshape(target2d.shape).astype(target2d.dtype)


_content_mse_vs_slab.defvjp(_content_mse_fwd, _content_mse_bwd)


def content_mse_loss(x, target):
    """mean((x - target)^2) via a Pallas TPU kernel (== F.mse_loss)."""
    assert x.shape == target.shape, "input / target feature map shape mismatch"
    _, _, _, padded_rows = _plan(x.size)
    return _content_mse_vs_slab(x, _to_padded_2d(target, padded_rows))


class ContentLoss:
    """JAX/Pallas port of the PyTorch ContentLoss module."""

    def __init__(self, feature_maps):
        # .detach() in torch == stop_gradient here (targets are constants).
        self.feature_maps = {
            key: jax.lax.stop_gradient(val) for key, val in feature_maps.items()
        }
        # Perf: the target is constant -> flatten/pad it to its lane-dense
        # (rows, 128) slab ONCE here instead of on every forward call.
        self._target_slabs = {}
        for key, val in self.feature_maps.items():
            _, _, _, padded_rows = _plan(val.size)
            self._target_slabs[key] = _to_padded_2d(val, padded_rows)

    def __call__(self, inputs, layer_name):
        x = inputs[layer_name]
        target = self.feature_maps[layer_name]
        assert x.shape == target.shape, "input / target feature map shape mismatch"
        return _content_mse_vs_slab(x, self._target_slabs[layer_name])


if __name__ == "__main__":
    key = jax.random.PRNGKey(0)
    k1, k2 = jax.random.split(key)

    # Small NCHW feature maps, as a conv backbone (e.g. resnet) would produce.
    shape = (2, 4, 16, 16)
    target_fm = jax.random.normal(k1, shape, dtype=jnp.float32)
    input_fm = jax.random.normal(k2, shape, dtype=jnp.float32)

    loss_module = ContentLoss({"conv4": target_fm})
    loss = loss_module({"conv4": input_fm}, "conv4")
    loss = jax.block_until_ready(loss)

    # Forward reference check against plain JAX mean-squared-error.
    ref = jnp.mean((input_fm - target_fm) ** 2)
    assert jnp.allclose(loss, ref, rtol=1e-5, atol=1e-6), (loss, ref)

    # Gradient check (style transfer backprops to the input image).
    g = jax.grad(lambda x: content_mse_loss(x, target_fm))(input_fm)
    g_ref = jax.grad(lambda x: jnp.mean((x - target_fm) ** 2))(input_fm)
    g = jax.block_until_ready(g)
    assert jnp.allclose(g, g_ref, rtol=1e-5, atol=1e-6)

    print("KERNEL_OK")
</pallas_src>

<mosaic_0001>
module attributes {stable_mosaic.version = 11 : i64} {
  func.func @_mse_partial_kernel(%arg0: i32, %arg1: i32, %arg2: memref<64x128xf32, #tpu.memory_space<vmem>>, %arg3: memref<64x128xf32, #tpu.memory_space<vmem>>, %arg4: memref<64x128xf32, #tpu.memory_space<vmem>>) attributes {dimension_semantics = [#tpu.dimension_semantics<parallel>, #tpu.dimension_semantics<arbitrary>], iteration_bounds = array<i64: 1, 1>, scalar_prefetch = 0 : i64, scratch_operands = 0 : i64, tpu.core_type = #tpu.core_type<tc>, window_params = [{transform_indices = @transform_0, window_bounds = array<i64: 64, 128>}, {transform_indices = @transform_1, window_bounds = array<i64: 64, 128>}, {transform_indices = @transform_2, window_bounds = array<i64: 64, 128>}]} {
    %c0_i32 = arith.constant 0 : i32
    %0 = arith.cmpi eq, %arg1, %c0_i32 : i32
    %1 = arith.extui %0 : i1 to i32
    %c0_i32_0 = arith.constant 0 : i32
    %2 = arith.cmpi ne, %1, %c0_i32_0 : i32
    scf.if %2 {
      %cst_7 = arith.constant 0.000000e+00 : f32
      %16 = vector.broadcast %cst_7 : f32 to vector<64x128xf32>
      %c0_8 = arith.constant 0 : index
      %c0_9 = arith.constant 0 : index
      %17 = vector.load %arg4[%c0_8, %c0_9] : memref<64x128xf32, #tpu.memory_space<vmem>>, vector<64x128xf32>
      tpu.vector_store %arg4[%c0_8, %c0_9], %16 {strides = array<i32>} : memref<64x128xf32, #tpu.memory_space<vmem>>, vector<64x128xf32>,
    } else {
    }
    %cst = arith.constant 0.000000e+00 : f32
    %3 = vector.broadcast %cst : f32 to vector<64x128xf32>
    %c0_i32_1 = arith.constant 0 : i32
    %c64_i32 = arith.constant 64 : i32
    %4 = arith.muli %c0_i32_1, %c64_i32 : i32
    %5 = tpu.assume_multiple %4, 64 : i32
    %6 = arith.index_cast %5 : i32 to index
    %c0 = arith.constant 0 : index
    %7 = vector.load %arg2[%6, %c0] : memref<64x128xf32, #tpu.memory_space<vmem>>, vector<64x128xf32>
    %8 = arith.index_cast %5 : i32 to index
    %c0_2 = arith.constant 0 : index
    %9 = vector.load %arg3[%8, %c0_2] : memref<64x128xf32, #tpu.memory_space<vmem>>, vector<64x128xf32>
    %10 = arith.subf %7, %9 : vector<64x128xf32>
    %11 = arith.mulf %10, %10 : vector<64x128xf32>
    %12 = arith.addf %3, %11 : vector<64x128xf32>
    %c1_i32 = arith.constant 1 : i32
    %c0_3 = arith.constant 0 : index
    %c0_4 = arith.constant 0 : index
    %13 = vector.load %arg4[%c0_3, %c0_4] : memref<64x128xf32, #tpu.memory_space<vmem>>, vector<64x128xf32>
    %14 = arith.addf %13, %12 : vector<64x128xf32>
    %c0_5 = arith.constant 0 : index
    %c0_6 = arith.constant 0 : index
    %15 = vector.load %arg4[%c0_5, %c0_6] : memref<64x128xf32, #tpu.memory_space<vmem>>, vector<64x128xf32>
    tpu.vector_store %arg4[%c0_5, %c0_6], %14 {strides = array<i32>} : memref<64x128xf32, #tpu.memory_space<vmem>>, vector<64x128xf32>,
    return
  }
  func.func @transform_0(%arg0: i32, %arg1: i32) -> (i32, i32) {
    %c1_i32 = arith.constant 1 : i32
    %0 = arith.muli %arg0, %c1_i32 : i32
    %1 = arith.addi %0, %arg1 : i32
    %c0_i32 = arith.constant 0 : i32
    %c0_i32_0 = arith.constant 0 : i32
    return %1, %c0_i32 : i32, i32
  }
  func.func @transform_1(%arg0: i32, %arg1: i32) -> (i32, i32) {
    %c1_i32 = arith.constant 1 : i32
    %0 = arith.muli %arg0, %c1_i32 : i32
    %1 = arith.addi %0, %arg1 : i32
    %c0_i32 = arith.constant 0 : i32
    %c0_i32_0 = arith.constant 0 : i32
    return %1, %c0_i32 : i32, i32
  }
  func.func @transform_2(%arg0: i32, %arg1: i32) -> (i32, i32) {
    %c0_i32 = arith.constant 0 : i32
    %c0_i32_0 = arith.constant 0 : i32
    return %arg0, %c0_i32 : i32, i32
  }
}

</mosaic_0001>

<bundles_post_ra>
// kernel: tpu_custom_call.1
= control target key start
LH: loop header
LB: loop body
LE: loop exit
PB: predicated region body
PF: predicated region fallthrough
CT: control target
= control target key end

     0   :  { %7 = vsyncpa [#allocation3], 0  ;;  %s274_s0 = inlined_call_operand.hbm [shape: f32[64,128], index: 0, kind: input, shape index: {}]   ;;  %s275_s1 = inlined_call_operand.hbm [shape: f32[64,128], index: 1, kind: input, shape index: {}]   ;;  %s276_s2 = inlined_call_operand.hbm [shape: f32[64,128], index: 2, kind: output, shape index: {}]  }
   0x1   :  { %8 = vsyncpa [#allocation6], 0 }
   0x2   :  { %9 = vsyncpa [#allocation4], 0  ;;  %s18_s11 = sshll.u32 %s274_s0, 4  ;;  %s236_s12 = smov [#allocation2]   ;;  %s19_s11 = int_to_ptr.hbm [resolvable:$true] %s18_s11 }
   0x3   :  { %s20_s13 = sshll.u32 %s236_s12, 4  ;;  %s35_s16 = sshll.u32 %s275_s1, 4  ;;  %s21_s13 = int_to_ptr.vmem [resolvable:$true] %s20_s13  ;;  %s36_s16 = int_to_ptr.hbm [resolvable:$true] %s35_s16 }
   0x4   :  { %s237_s17 = smov 128   ;;  %s238_s18 = smov 8  }
   0x5   :  { %26 = dma.hbm_to_vmem [thread:$0]  %s19_s11, 1024, %s21_s13, [#allocation3], %s237_s17, %s237_s17, %s238_s18  }
   0x6   :  { %s239_s19 = smov [#allocation5]  }
   0x7   :  { %s37_s20 = sshll.u32 %s239_s19, 4  ;;  %s38_s20 = int_to_ptr.vmem [resolvable:$true] %s37_s20 }
   0x8   :  { %43 = dma.hbm_to_vmem [thread:$0]  %s36_s16, 1024, %s38_s20, [#allocation6], %s237_s17, %s237_s17, %s238_s18  }
   0x9   :  { %230 = dma.done.wait [#allocation3], 1024  }
   0xa   :  { %231 = vsyncadd [#allocation3], 4294966272 }
   0xb   :  { %232 = dma.done.wait [#allocation6], 1024  }
   0xc   :  { %233 = vsyncadd [#allocation6], 4294966272  ;;  %v68_v0 = vld [vmem:[#allocation2] sm:$0xff]  ;;  %v69_v2 = vld [vmem:[#allocation2 + $0x8] sm:$0xff]  ;;  %s240_s0 = smov [#allocation7]   ;;  %s138_s23 = sshll.u32 %s276_s2, 4  ;;  %s139_s23 = int_to_ptr.hbm [resolvable:$true] %s138_s23 }
   0xd   :  { %v76_v1 = vld [vmem:[#allocation5] sm:$0xff]  ;;  %v77_v4 = vld [vmem:[#allocation5 + $0x8] sm:$0xff]  ;;  %v70_v5 = vld [vmem:[#allocation2 + $0x10] sm:$0xff]  ;;  %s136_s1 = sshll.u32 %s240_s0, 4  ;;  %s137_s1 = int_to_ptr.vmem [resolvable:$true] %s136_s1 }
   0xe   :  { %v84_v3 = vsub.f32 %v68_v0, %v76_v1  ;;  %v78_v6 = vld [vmem:[#allocation5 + $0x10] sm:$0xff]  ;;  %v85_v7 = vsub.f32 %v69_v2, %v77_v4  ;;  %v71_v9 = vld [vmem:[#allocation2 + $0x18] sm:$0xff]  ;;  %v72_v11 = vld [vmem:[#allocation2 + $0x20] sm:$0xff] }
   0xf   :  { %v86_v8 = vsub.f32 %v70_v5, %v78_v6  ;;  %v79_v10 = vld [vmem:[#allocation5 + $0x18] sm:$0xff]  ;;  %v80_v14 = vld [vmem:[#allocation5 + $0x20] sm:$0xff]  ;;  %v73_v15 = vld [vmem:[#allocation2 + $0x28] sm:$0xff] }
  0x10   :  { %v92_v12 = vmul.f32 %v84_v3, %v84_v3  ;;  %v87_v13 = vsub.f32 %v71_v9, %v79_v10  ;;  %v81_v16 = vld [vmem:[#allocation5 + $0x28] sm:$0xff]  ;;  %v93_v17 = vmul.f32 %v85_v7, %v85_v7  ;;  %v88_v19 = vsub.f32 %v72_v11, %v80_v14  ;;  %v74_v21 = vld [vmem:[#allocation2 + $0x30] sm:$0xff]  ;;  %v75_v23 = vld [vmem:[#allocation2 + $0x38] sm:$0xff] }
  0x11   :  { %v94_v18 = vmul.f32 %v86_v8, %v86_v8  ;;  %v89_v20 = vsub.f32 %v73_v15, %v81_v16  ;;  %v82_v22 = vld [vmem:[#allocation5 + $0x30] sm:$0xff]  ;;  %v83_v26 = vld [vmem:[#allocation5 + $0x38] sm:$0xff] }
  0x12   :  { %v95_v24 = vmul.f32 %v87_v13, %v87_v13  ;;  %v90_v25 = vsub.f32 %v74_v21, %v82_v22  ;;  %v96_v27 = vmul.f32 %v88_v19, %v88_v19  ;;  %124 = vst [vmem:[#allocation7] sm:$0xff] %v92_v12  ;;  %v91_v30 = vsub.f32 %v75_v23, %v83_v26 }
  0x13   :  { %v97_v28 = vmul.f32 %v89_v20, %v89_v20  ;;  %125 = vst [vmem:[#allocation7 + $0x8] sm:$0xff] %v93_v17 }
  0x14   :  { %v98_v29 = vmul.f32 %v90_v25, %v90_v25  ;;  %126 = vst [vmem:[#allocation7 + $0x10] sm:$0xff] %v94_v18  ;;  %v99_v31 = vmul.f32 %v91_v30, %v91_v30 }
  0x15   :  { %127 = vst [vmem:[#allocation7 + $0x18] sm:$0xff] %v95_v24 }
  0x16   :  { %128 = vst [vmem:[#allocation7 + $0x20] sm:$0xff] %v96_v27 }
  0x17   :  { %129 = vst [vmem:[#allocation7 + $0x28] sm:$0xff] %v97_v28 }
  0x18   :  { %130 = vst [vmem:[#allocation7 + $0x30] sm:$0xff] %v98_v29 }
  0x19   :  { %131 = vst [vmem:[#allocation7 + $0x38] sm:$0xff] %v99_v31 }
  0x1a   :  { %144 = dma.vmem_to_hbm [thread:$0]  %s137_s1, 1024, %s139_s23, [#allocation4], %s237_s17, %s237_s17, %s238_s18  }
  0x1b   :  { %234 = dma.done.wait [#allocation4], 1024  }
  0x1c   :  { %235 = vsyncadd [#allocation4], 4294966272 }
  0x1d   :  { %149 = vsyncpa [#allocation3], 1 }
  0x1e   :  { %150 = vsyncpa [#allocation6], 1 }
  0x1f   :  { %151 = vsyncpa [#allocation4], 1 }

</bundles_post_ra>
